<compile_context>
chip_gen: v6e
topology: v6e:2x2x1
jax: 0.10.0
libtpu: 0.0.40
codegen_flags: <defaults>
</compile_context>

<pallas_src>
from functools import partial

import numpy as np
import jax
import jax.numpy as jnp
from jax.experimental import pallas as pl
from jax.experimental.pallas import tpu as pltpu


def _graph_projection_kernel(x_ref, p_ref, assign_ref, nodes_ref, xd_ref, *,
                             C, bnum, bnod, h, w):
    # Per grid step (one batch element):
    #   x_ref     : (C, HW)       pixels lane-dense, full-image row-major order
    #   p_ref     : (2*node_num + 2C + n, HW)  packed grid-invariant constants
    #   assign_ref: (node_num, n) block-local soft assignment
    #   nodes_ref : (C, node_num) L2-normalized nodes (final layout)
    #   xd_ref    : (2C+1, HW)    VMEM scratch for [x^2 ; x ; 1]
    f32 = jnp.float32
    node_num = bnum * bnum * bnod
    n = h * w
    HW = (bnum * h) * (bnum * w)

    # --- packed grid-invariant constants (single VMEM-resident tile) ---------
    Wd = p_ref[0:node_num, 0:2 * C + 1]                        # [isig2 | -2*anc*isig2 | c0]
    ancT = p_ref[node_num:node_num + C, 0:node_num]            # (C, node_num)
    isigT = p_ref[node_num + C:node_num + 2 * C, 0:node_num]   # (C, node_num)
    maskN = p_ref[node_num + 2 * C:2 * node_num + 2 * C, :]    # (node_num, HW): 0 / -1e30
    selT = p_ref[2 * node_num + 2 * C:, :]                     # (n, HW): 0/1 block-local gather

    x = x_ref[...].astype(f32)                                 # (C, HW)

    # Xd = [x^2 ; x ; 1] built through a scratch ref (sublane-window stores).
    xd_ref[0:C, :] = x * x
    xd_ref[C:2 * C, :] = x
    xd_ref[2 * C:2 * C + 1, :] = jnp.ones((1, HW), f32)
    Xd = xd_ref[...]                                           # (2C+1, HW)

    # dist[j,p] = -0.5 * || (x[:,p] - anchor[j]) / sigma[j] ||^2 (expanded
    # quadratic, one fused MXU contraction), then block-diagonal mask.
    dist = -0.5 * jnp.dot(Wd, Xd, preferred_element_type=f32)  # (node_num, HW)
    dist = dist + maskN

    # Per-block softmax over the bnod nodes of each spatial block == softmax
    # over all node_num nodes per pixel, because off-block entries are ~-1e30
    # and underflow to exactly 0 after exp.
    m = jnp.max(dist, axis=0, keepdims=True)
    e = jnp.exp(dist - m)
    assign_full = e / jnp.sum(e, axis=0, keepdims=True)        # (node_num, HW)

    # Re-order pixels into the block-local layout with a 0/1 selection matmul
    # (valid because off-block assignments are exactly zero).
    assign_ref[...] = jax.lax.dot_general(
        assign_full, selT, (((1,), (1,)), ((), ())),
        preferred_element_type=f32).astype(assign_ref.dtype)   # (node_num, n)

    # Aggregation + denominator in a single matmul: [x^2;x;1] @ assign^T.
    ext = jax.lax.dot_general(Xd, assign_full, (((1,), (1,)), ((), ())),
                              preferred_element_type=f32)      # (2C+1, node_num)
    aggT = ext[C:2 * C, :]                                     # sum_p assign*x   (C, node_num)
    den = ext[2 * C:2 * C + 1, :]                              # sum_p assign     (1, node_num)

    nodes = isigT * (aggT - ancT * den)                        # (C, node_num)
    # approx reciprocal: the per-node (positive) scale error cancels exactly in
    # the per-node L2 normalization below (den broadcasts over C).  Do NOT
    # return un-normalized nodes or reorder this epilogue without switching to
    # an exact divide.
    nodes = nodes * pl.reciprocal(den + 1e-9, approx=True)

    # Fused F.normalize epilogue: per node over C (axis 0), then over the flat
    # node_num*C vector of this batch element; rsqrt+mul instead of sqrt+div.
    inv_c = jax.lax.rsqrt(
        jnp.maximum(jnp.sum(nodes * nodes, axis=0, keepdims=True), 1e-24))
    nodes = nodes * inv_c
    inv_g = jax.lax.rsqrt(
        jnp.maximum(jnp.sum(nodes * nodes, axis=(0, 1), keepdims=True), 1e-24))
    nodes_ref[...] = (nodes * inv_g).astype(nodes_ref.dtype)   # (C, node_num)


@partial(jax.jit, static_argnums=(3, 4), static_argnames=("normalize_input",))
def graph_projection(x, anchor, sigma_param, bnum, bnod, normalize_input=False):
    B, C, H, W = x.shape
    h, w = H // bnum, W // bnum
    n = h * w
    HW = H * W
    node_num = bnum * bnum * bnod
    assert anchor.shape == (node_num, C) and sigma_param.shape == (node_num, C)
    assert 2 * C + 1 <= HW and node_num <= HW

    if normalize_input:
        x = x / jnp.maximum(jnp.linalg.norm(x, axis=1, keepdims=True), 1e-12)

    # Free (metadata-only) reshape: pixels stay in full-image row-major order
    # and become a lane-dense (HW) axis; block structure is handled in-kernel.
    xf = x.reshape(B, C, HW)

    # --- hoisted, batch-independent parameter transforms ---------------------
    f32 = jnp.float32
    anc = anchor.astype(f32)                                   # (node_num, C)
    sig = jax.nn.sigmoid(sigma_param.astype(f32))
    isig = 1.0 / sig
    isig2 = isig * isig
    w2 = anc * isig2
    c0 = jnp.sum(anc * w2, axis=-1, keepdims=True)             # (node_num, 1)
    Wd = jnp.concatenate([isig2, -2.0 * w2, c0], axis=-1)      # (node_num, 2C+1)

    # --- trace-time numpy constants (zero runtime cost) ----------------------
    pix = np.arange(HW)
    prow, pcol = pix // W, pix % W
    pix_blk = (prow // h) * bnum + (pcol // w)                 # block id per pixel
    node_blk = np.arange(node_num) // bnod                     # block id per node
    mask_neg = np.where(node_blk[:, None] == pix_blk[None, :],
                        0.0, -1e30).astype(np.float32)         # (node_num, HW)
    blocal = (prow % h) * w + (pcol % w)                       # block-local pixel index
    sel_T = (np.arange(n)[:, None] == blocal[None, :]).astype(np.float32)  # (n, HW)

    def pad_lanes(a):
        return jnp.pad(a, ((0, 0), (0, HW - a.shape[1])))

    # One packed grid-invariant constant tile -> one BlockSpec / one DMA stream.
    packed = jnp.concatenate([
        pad_lanes(Wd),              # rows [0, node_num)
        pad_lanes(anc.T),           # rows [node_num, node_num+C)
        pad_lanes(isig.T),          # rows [node_num+C, node_num+2C)
        jnp.asarray(mask_neg),      # rows [node_num+2C, 2*node_num+2C)
        jnp.asarray(sel_T),         # rows [2*node_num+2C, 2*node_num+2C+n)
    ], axis=0)                      # (2*node_num + 2C + n, HW) f32

    kernel = partial(_graph_projection_kernel,
                     C=C, bnum=bnum, bnod=bnod, h=h, w=w)

    # NOTE: soft_assign is stored in x.dtype (matches the PyTorch module); for
    # bf16 inputs the assignment weights lose precision vs the f32 reference.
    soft_assign, nodes = pl.pallas_call(
        kernel,
        out_shape=(
            jax.ShapeDtypeStruct((B, node_num, n), x.dtype),
            jax.ShapeDtypeStruct((B, C, node_num), x.dtype),
        ),
        grid=(B,),
        in_specs=[
            pl.BlockSpec((None, C, HW), lambda b: (b, 0, 0)),
            pl.BlockSpec(packed.shape, lambda b: (0, 0)),      # grid-invariant
        ],
        out_specs=(
            pl.BlockSpec((None, node_num, n), lambda b: (b, 0, 0)),
            pl.BlockSpec((None, C, node_num), lambda b: (b, 0, 0)),
        ),
        scratch_shapes=[pltpu.VMEM((2 * C + 1, HW), jnp.float32)],
        compiler_params=pltpu.CompilerParams(
            dimension_semantics=("parallel",),
            vmem_limit_bytes=32 * 1024 * 1024),
    )(xf, packed)

    # Outputs already leave the kernel in their final layouts: no post-kernel
    # reshape/transpose XLA passes.
    return nodes, soft_assign


def _reference_np(x, anchor, sigma_param, bnum, bnod):
    # Direct numpy transcription of the PyTorch forward (for verification).
    B, C, H, W = x.shape
    h, w = H // bnum, W // bnum
    n = h * w
    node_num = bnum * bnum * bnod
    sigma = 1.0 / (1.0 + np.exp(-sigma_param))

    def block_pixels(node_id):
        block_id = node_id // bnod
        h_sta = (block_id // bnum) * h
        w_sta = (block_id % bnum) * w
        tmp = x[:, :, h_sta:h_sta + h, w_sta:w_sta + w]
        return tmp.reshape(B, C, -1).transpose(0, 2, 1)        # (B, n, C)

    soft_assign = np.zeros((B, node_num, n), dtype=np.float32)
    for node_id in range(node_num):
        residual = (block_pixels(node_id) - anchor[node_id]) / sigma[node_id]
        soft_assign[:, node_id, :] = -np.sum(residual ** 2, axis=2) / 2.0

    soft_ass = np.zeros_like(soft_assign)
    for block_id in range(bnum * bnum):
        s, e = block_id * bnod, block_id * bnod + bnod
        z = soft_assign[:, s:e, :]
        z = z - z.max(axis=1, keepdims=True)
        ez = np.exp(z)
        soft_ass[:, s:e, :] = ez / ez.sum(axis=1, keepdims=True)

    eps = 1e-9
    nodes = np.zeros((B, node_num, C), dtype=np.float32)
    for node_id in range(node_num):
        residual = (block_pixels(node_id) - anchor[node_id]) / sigma[node_id]
        a = soft_ass[:, node_id, :]
        nodes[:, node_id, :] = (residual * a[:, :, None]).sum(axis=1) / (
            a.sum(axis=1)[:, None] + eps)

    def l2n(v, axis):
        return v / np.maximum(np.linalg.norm(v, axis=axis, keepdims=True), 1e-12)

    nodes = l2n(nodes, 2)
    flat = l2n(nodes.reshape(B, -1), 1)
    nodes = flat.reshape(B, node_num, C).transpose(0, 2, 1)
    return nodes, soft_ass


if __name__ == "__main__":
    # module config: bnum=2, bnod=4, dim=C=8 -> node_num = 16
    bnum, bnod, C = 2, 4, 8
    node_num = bnum * bnum * bnod
    B, H, W = 2, 16, 16

    key = jax.random.PRNGKey(0)
    kx, ka, ks = jax.random.split(key, 3)
    x = jax.random.normal(kx, (B, C, H, W), dtype=jnp.float32)
    anchor = jax.random.uniform(ka, (node_num, C), dtype=jnp.float32)       # torch.rand
    sigma_param = jax.random.uniform(ks, (node_num, C), dtype=jnp.float32)  # torch.rand

    nodes, soft_assign = graph_projection(x, anchor, sigma_param, bnum, bnod)
    nodes = jax.block_until_ready(nodes)
    soft_assign = jax.block_until_ready(soft_assign)

    nodes_ref, assign_ref = _reference_np(
        np.asarray(x), np.asarray(anchor), np.asarray(sigma_param), bnum, bnod)
    # Tolerances account for the expanded-quadratic distance reformulation
    # (mild f32 cancellation, then exponentiated in the softmax); the approx
    # reciprocal used for 1/den cancels exactly in the fused L2 normalization.
    np.testing.assert_allclose(np.asarray(soft_assign), assign_ref, rtol=2e-3, atol=2e-4)
    np.testing.assert_allclose(np.asarray(nodes), nodes_ref, rtol=2e-3, atol=2e-4)

    print("KERNEL_OK")
</pallas_src>

<mosaic_0001>
module attributes {stable_mosaic.version = 11 : i64} {
  func.func @_graph_projection_kernel(%arg0: i32, %arg1: memref<1x8x256xf32, #tpu.memory_space<vmem>>, %arg2: memref<112x256xf32, #tpu.memory_space<vmem>>, %arg3: memref<1x16x64xf32, #tpu.memory_space<vmem>>, %arg4: memref<1x8x16xf32, #tpu.memory_space<vmem>>, %arg5: memref<17x256xf32, #tpu.memory_space<vmem>>) attributes {dimension_semantics = [#tpu.dimension_semantics<parallel>], iteration_bounds = array<i64: 2>, scalar_prefetch = 0 : i64, scratch_operands = 1 : i64, tpu.core_type = #tpu.core_type<tc>, window_params = [{transform_indices = @transform_0, window_bounds = array<i64: 1, 8, 256>}, {pipeline_mode = #tpu.pipeline_mode<synchronous>, transform_indices = @transform_1, window_bounds = array<i64: 112, 256>}, {transform_indices = @transform_2, window_bounds = array<i64: 1, 16, 64>}, {transform_indices = @transform_3, window_bounds = array<i64: 1, 8, 16>}]} {
    %c0 = arith.constant 0 : index
    %c0_0 = arith.constant 0 : index
    %0 = vector.load %arg2[%c0, %c0_0] : memref<112x256xf32, #tpu.memory_space<vmem>>, vector<16x17xf32>
    %c16 = arith.constant 16 : index
    %c0_1 = arith.constant 0 : index
    %1 = vector.load %arg2[%c16, %c0_1] : memref<112x256xf32, #tpu.memory_space<vmem>>, vector<8x16xf32>
    %c24 = arith.constant 24 : index
    %c0_2 = arith.constant 0 : index
    %2 = vector.load %arg2[%c24, %c0_2] : memref<112x256xf32, #tpu.memory_space<vmem>>, vector<8x16xf32>
    %c32 = arith.constant 32 : index
    %c0_3 = arith.constant 0 : index
    %3 = vector.load %arg2[%c32, %c0_3] : memref<112x256xf32, #tpu.memory_space<vmem>>, vector<16x256xf32>
    %c48 = arith.constant 48 : index
    %c0_4 = arith.constant 0 : index
    %4 = vector.load %arg2[%c48, %c0_4] : memref<112x256xf32, #tpu.memory_space<vmem>>, vector<64x256xf32>
    %c0_5 = arith.constant 0 : index
    %c0_6 = arith.constant 0 : index
    %c0_7 = arith.constant 0 : index
    %5 = vector.load %arg1[%c0_5, %c0_6, %c0_7] : memref<1x8x256xf32, #tpu.memory_space<vmem>>, vector<1x8x256xf32>
    %6 = vector.shape_cast %5 : vector<1x8x256xf32> to vector<8x256xf32>
    %7 = arith.mulf %6, %6 : vector<8x256xf32>
    %c0_8 = arith.constant 0 : index
    %c0_9 = arith.constant 0 : index
    %8 = vector.load %arg5[%c0_8, %c0_9] : memref<17x256xf32, #tpu.memory_space<vmem>>, vector<8x256xf32>
    tpu.vector_store %arg5[%c0_8, %c0_9], %7 {strides = array<i32>} : memref<17x256xf32, #tpu.memory_space<vmem>>, vector<8x256xf32>,
    %c8 = arith.constant 8 : index
    %c0_10 = arith.constant 0 : index
    %9 = vector.load %arg5[%c8, %c0_10] : memref<17x256xf32, #tpu.memory_space<vmem>>, vector<8x256xf32>
    tpu.vector_store %arg5[%c8, %c0_10], %6 {strides = array<i32>} : memref<17x256xf32, #tpu.memory_space<vmem>>, vector<8x256xf32>,
    %cst = arith.constant 1.000000e+00 : f32
    %10 = vector.broadcast %cst : f32 to vector<1x256xf32>
    %c16_11 = arith.constant 16 : index
    %c0_12 = arith.constant 0 : index
    %11 = vector.load %arg5[%c16_11, %c0_12] : memref<17x256xf32, #tpu.memory_space<vmem>>, vector<1x256xf32>
    tpu.vector_store %arg5[%c16_11, %c0_12], %10 {strides = array<i32>} : memref<17x256xf32, #tpu.memory_space<vmem>>, vector<1x256xf32>,
    %c0_13 = arith.constant 0 : index
    %c0_14 = arith.constant 0 : index
    %12 = vector.load %arg5[%c0_13, %c0_14] : memref<17x256xf32, #tpu.memory_space<vmem>>, vector<17x256xf32>
    %cst_15 = arith.constant dense<0.000000e+00> : vector<16x256xf32>
    %13 = tpu.matmul %0, %12, %cst_15 {dimension_numbers = #tpu.dot_dimension_numbers<[1], [0], [0], [1], [0, 0, 1, 1], [], []>} : vector<16x17xf32>, vector<17x256xf32>, vector<16x256xf32> -> vector<16x256xf32>
    %cst_16 = arith.constant -5.000000e-01 : f32
    %14 = vector.broadcast %cst_16 : f32 to vector<16x256xf32>
    %15 = arith.mulf %14, %13 : vector<16x256xf32>
    %16 = arith.addf %15, %3 : vector<16x256xf32>
    %cst_17 = arith.constant dense<0xFF800000> : vector<256xf32>
    %17 = vector.multi_reduction <maximumf>, %16, %cst_17 [0] : vector<16x256xf32> to vector<256xf32>
    %18 = vector.shape_cast %17 : vector<256xf32> to vector<1x256xf32>
    %19 = vector.broadcast %18 : vector<1x256xf32> to vector<16x256xf32>
    %20 = arith.subf %16, %19 : vector<16x256xf32>
    %21 = math.exp %20 : vector<16x256xf32>
    %cst_18 = arith.constant dense<0.000000e+00> : vector<256xf32>
    %22 = vector.multi_reduction <add>, %21, %cst_18 [0] : vector<16x256xf32> to vector<256xf32>
    %23 = vector.shape_cast %22 : vector<256xf32> to vector<1x256xf32>
    %24 = vector.broadcast %23 : vector<1x256xf32> to vector<16x256xf32>
    %25 = arith.divf %21, %24 : vector<16x256xf32>
    %cst_19 = arith.constant dense<0.000000e+00> : vector<16x64xf32>
    %26 = tpu.matmul %25, %4, %cst_19 {dimension_numbers = #tpu.dot_dimension_numbers<[1], [1], [0], [0], [0, 0, 1, 0], [], []>} : vector<16x256xf32>, vector<64x256xf32>, vector<16x64xf32> -> vector<16x64xf32>
    %c0_20 = arith.constant 0 : index
    %c0_21 = arith.constant 0 : index
    %c0_22 = arith.constant 0 : index
    %27 = vector.load %arg3[%c0_20, %c0_21, %c0_22] : memref<1x16x64xf32, #tpu.memory_space<vmem>>, vector<1x16x64xf32>
    %28 = vector.shape_cast %27 : vector<1x16x64xf32> to vector<16x64xf32>
    %29 = vector.shape_cast %26 : vector<16x64xf32> to vector<1x16x64xf32>
    tpu.vector_store %arg3[%c0_20, %c0_21, %c0_22], %29 {strides = array<i32>} : memref<1x16x64xf32, #tpu.memory_space<vmem>>, vector<1x16x64xf32>,
    %cst_23 = arith.constant dense<0.000000e+00> : vector<17x16xf32>
    %30 = tpu.matmul %12, %25, %cst_23 {dimension_numbers = #tpu.dot_dimension_numbers<[1], [1], [0], [0], [0, 0, 1, 0], [], []>} : vector<17x256xf32>, vector<16x256xf32>, vector<17x16xf32> -> vector<17x16xf32>
    %31 = vector.extract_strided_slice %30 {offsets = [8, 0], sizes = [8, 16], strides = [1, 1]} : vector<17x16xf32> to vector<8x16xf32>
    %32 = vector.extract_strided_slice %30 {offsets = [16, 0], sizes = [1, 16], strides = [1, 1]} : vector<17x16xf32> to vector<1x16xf32>
    %33 = vector.broadcast %32 : vector<1x16xf32> to vector<8x16xf32>
    %34 = arith.mulf %1, %33 : vector<8x16xf32>
    %35 = arith.subf %31, %34 : vector<8x16xf32>
    %36 = arith.mulf %2, %35 : vector<8x16xf32>
    %cst_24 = arith.constant 9.99999971E-10 : f32
    %37 = vector.broadcast %cst_24 : f32 to vector<1x16xf32>
    %38 = arith.addf %32, %37 : vector<1x16xf32>
    %39 = tpu.reciprocal %38 {approx = true} : vector<1x16xf32> -> vector<1x16xf32>
    %40 = vector.broadcast %39 : vector<1x16xf32> to vector<8x16xf32>
    %41 = arith.mulf %36, %40 : vector<8x16xf32>
    %42 = arith.mulf %41, %41 : vector<8x16xf32>
    %cst_25 = arith.constant dense<0.000000e+00> : vector<16xf32>
    %43 = vector.multi_reduction <add>, %42, %cst_25 [0] : vector<8x16xf32> to vector<16xf32>
    %44 = vector.shape_cast %43 : vector<16xf32> to vector<1x16xf32>
    %cst_26 = arith.constant 1.000000e-24 : f32
    %45 = vector.broadcast %cst_26 : f32 to vector<1x16xf32>
    %46 = arith.maximumf %44, %45 : vector<1x16xf32>
    %47 = math.rsqrt %46 : vector<1x16xf32>
    %48 = vector.broadcast %47 : vector<1x16xf32> to vector<8x16xf32>
    %49 = arith.mulf %41, %48 : vector<8x16xf32>
    %50 = arith.mulf %49, %49 : vector<8x16xf32>
    %51 = vector.shape_cast %50 : vector<8x16xf32> to vector<1x8x16xf32>
    %cst_27 = arith.constant dense<0.000000e+00> : vector<1xf32>
    %52 = vector.multi_reduction <add>, %51, %cst_27 [1, 2] : vector<1x8x16xf32> to vector<1xf32>
    %53 = vector.shape_cast %52 : vector<1xf32> to vector<1x1x1xf32>
    %54 = vector.extract %53[0, 0, 0] : f32 from vector<1x1x1xf32>
    %55 = vector.broadcast %54 : f32 to vector<1x1xf32>
    %cst_28 = arith.constant 1.000000e-24 : f32
    %56 = vector.broadcast %cst_28 : f32 to vector<1x1xf32>
    %57 = arith.maximumf %55, %56 : vector<1x1xf32>
    %58 = math.rsqrt %57 : vector<1x1xf32>
    %59 = vector.broadcast %58 : vector<1x1xf32> to vector<8x16xf32>
    %60 = arith.mulf %49, %59 : vector<8x16xf32>
    %c0_29 = arith.constant 0 : index
    %c0_30 = arith.constant 0 : index
    %c0_31 = arith.constant 0 : index
    %61 = vector.load %arg4[%c0_29, %c0_30, %c0_31] : memref<1x8x16xf32, #tpu.memory_space<vmem>>, vector<1x8x16xf32>
    %62 = vector.shape_cast %61 : vector<1x8x16xf32> to vector<8x16xf32>
    %63 = vector.shape_cast %60 : vector<8x16xf32> to vector<1x8x16xf32>
    tpu.vector_store %arg4[%c0_29, %c0_30, %c0_31], %63 {strides = array<i32>} : memref<1x8x16xf32, #tpu.memory_space<vmem>>, vector<1x8x16xf32>,
    return
  }
  func.func @transform_0(%arg0: i32) -> (i32, i32, i32) {
    %c0_i32 = arith.constant 0 : i32
    %c0_i32_0 = arith.constant 0 : i32
    %c0_i32_1 = arith.constant 0 : i32
    return %arg0, %c0_i32, %c0_i32_0 : i32, i32, i32
  }
  func.func @transform_1(%arg0: i32) -> (i32, i32) {
    %c0_i32 = arith.constant 0 : i32
    %c0_i32_0 = arith.constant 0 : i32
    %c0_i32_1 = arith.constant 0 : i32
    return %c0_i32, %c0_i32_0 : i32, i32
  }
  func.func @transform_2(%arg0: i32) -> (i32, i32, i32) {
    %c0_i32 = arith.constant 0 : i32
    %c0_i32_0 = arith.constant 0 : i32
    %c0_i32_1 = arith.constant 0 : i32
    return %arg0, %c0_i32, %c0_i32_0 : i32, i32, i32
  }
  func.func @transform_3(%arg0: i32) -> (i32, i32, i32) {
    %c0_i32 = arith.constant 0 : i32
    %c0_i32_0 = arith.constant 0 : i32
    %c0_i32_1 = arith.constant 0 : i32
    return %arg0, %c0_i32, %c0_i32_0 : i32, i32, i32
  }
}

</mosaic_0001>

<bundles_post_ra>
// kernel: graph_projection.1
= control target key start
LH: loop header
LB: loop body
LE: loop exit
PB: predicated region body
PF: predicated region fallthrough
CT: control target
= control target key end

     0   :  { %9 = vsyncpa [#allocation4], 0  ;;  %s1131_s0 = inlined_call_operand.vmem [shape: f32[2,8,256], index: 0, kind: input, shape index: {}]   ;;  %s1132_s1 = inlined_call_operand.vmem [shape: f32[112,256], index: 1, kind: input, shape index: {}]   ;;  %s1133_s2 = inlined_call_operand.hbm [shape: f32[2,16,64], index: 2, kind: output, shape index: {0}]   ;;  %s1134_s3 = inlined_call_operand.hbm [shape: f32[2,8,16], index: 3, kind: output, shape index: {1}]  }
   0x1   :  { %11 = vsyncpa [#allocation4 + $0x1], 0 }
   0x2   :  { %12 = vsyncpa [#allocation6], 0 }
   0x3   :  { %14 = vsyncpa [#allocation6 + $0x1], 0  ;;  %s902_s12 = smov 0   ;;  %s904_s13 = smov 0  }
   0x4   :  { %s906_s14 = smov 0   ;;  %s908_s15 = smov 0  }
   0x5 LB: > { %s923_s16 = sadd.s32 4294967295, %s874_s15   ;;  %s695_s17 = sadd.s32 4294967294, %s874_s15   ;;  %s874_s15 = sphi %s908_s15, %s1140_s15   ;;  %s870_s14 = sphi %s906_s14, %s1139_s14   ;;  %s866_s13 = sphi %s904_s13, %s1138_s13   ;;  %s862_s12 = sphi %s902_s12, %s1137_s12  }
   0x6   : > { %s927_s18 = sadd.s32 1, %s874_s15   ;;  %s74_s19 = sadd.s32 1, %s870_s14 }
   0x7   : > { %s71_s20 = ssub.s32 %s874_s15, %s927_s18  ;;  %p84_p0 = scmp.ne.s32.totalorder %s870_s14, %s866_s13 }
   0x8   : > { %p72_p1 = scmp.eq.s32.totalorder %s71_s20, 0  ;;  %p85_p2 = scmp.eq.s32.totalorder %s923_s16, 1 }
   0x9   : > { %p90_p3 = scmp.ne.s32.totalorder %s866_s13, %s862_s12  ;;  %p91_p4 = scmp.eq.s32.totalorder %s695_s17, 1 }
   0xa   : > { %s938_s21 = scalar_select %p72_p1, %s870_s14, %s74_s19  }
   0xb   : > { %p940_p5 = por %p85_p2, %p84_p0  ;;  %p944_p6 = por %p91_p4, %p90_p3 }
   0xc   : > { %p698_p7 = scmp.ge.s32.totalorder %s874_s15, 1  ;;  %p146_p8 = scmp.lt.s32.totalorder %s874_s15, 3 }
   0xe   : > { %p147_p9 = pnand %p698_p7, %p146_p8 }
   0xf   : > { %p175_p10 = scmp.lt.s32.totalorder (!%p147_p9), %s923_s16, 1  ;;  %s1047_s10 = sand.u32 (!%p147_p9), 1, %s866_s13  }
  0x10   : > { %150 = sbr.rel (%p147_p9) target bundleno = 801 (0x321), region = 28  ;;  %s699_s11 = sshll.u32 (!%p147_p9), %s1047_s10, 4 }
  0x11   : > { %s1050_s17 = scalar_lea.vmem (!%p147_p9), [#allocation3], %s699_s11  ;;  %s715_s27 = sshll.u32 (!%p147_p9), %s923_s16, 8 }
  0x12   : > { %s588_s26 = sshll.u32 (!%p147_p9), %s1050_s17, 4  ;;  %s1070_s30 = scalar_lea.hbm (!%p147_p9), %s1133_s2, %s715_s27  ;;  %s1064_s26 = int_to_ptr.vmem [resolvable:$true] %s588_s26 }
  0x13   : > { %s570_s4 = scalar_lea.sflag (!%p147_p9), [#allocation4], %s1047_s10  ;;  %s784_s5 = scalar_lea.vmem (!%p147_p9), %s1064_s26, 256 }
  0x14   : > { %p785_p11 = scmp.ne.s32.totalorder (!%p147_p9), %s1064_s26, %s784_s5  ;;  %s878_s6 = smov (!%p147_p9), [#allocation3]  }
  0x15   : > { %v212_v0 = vlaneseq  ;;  %v876_v1 = vmov 0.0   ;;  %s176_s24 = scalar_select %p175_p10, %s923_s16, 1  ;;  %v877_v2 = vmov 1.0   ;;  %vm232_vm1 = vcmask 1040384   ;;  %v180_v9 = vld [vmem:[%s1132_s1] sm:$0xff]  ;;  %v181_v10 = vld [vmem:[%s1132_s1 + $0x10] sm:$0xff] }
  0x16   : > { %303 = vmatprep.mubr.f32.mxu0 %v876_v1  ;;  %vm225_vm2 = vcmask 138240   ;;  %v203_v11 = vld [vmem:[%s1132_s1 + $0xd8] sm:$0xff]  ;;  %v202_v12 = vld [vmem:[%s1132_s1 + $0xd0] sm:$0xff]  ;;  %v201_v13 = vld [vmem:[%s1132_s1 + $0xc8] sm:$0xff]  ;;  %vm445_vm3 = vcmask 523264   ;;  %vm542_vm4 = vcmask 130048   ;;  %p786_p12 = pnand %p785_p11, %p940_p5 }
  0x17   : > { %vm214_vm0 = vcmp.lt.s32.totalorder %v212_v0, 256  ;;  %s714_s25 = sshll.u32 %s176_s24, 4  ;;  %386 = vmatprep.subr.mxu1 %v203_v11  ;;  %v200_v14 = vld [vmem:[%s1132_s1 + $0xc0] sm:$0xff]  ;;  %v199_v15 = vld [vmem:[%s1132_s1 + $0xb8] sm:$0xff]  ;;  %v198_v16 = vld [vmem:[%s1132_s1 + $0xb0] sm:$0xff]  ;;  %s788_s7 = sshll.u32 %s878_s6, 4  ;;  %s789_s7 = int_to_ptr.vmem [resolvable:$false] %s788_s7 }
  0x18   : > { %217 = vst.msk [vmem:[#allocation2 + $0x20] ss:$8 sm:$0x3] %vm214_vm0, %v877_v2  ;;  %s179_s28 = scalar_lea.vmem %s1131_s0, %s714_s25  ;;  %387 = vmatpush1.xpose.msra.mxu1 %v202_v12  ;;  %v197_v17 = vld [vmem:[%s1132_s1 + $0xa8] sm:$0xff]  ;;  %v196_v18 = vld [vmem:[%s1132_s1 + $0xa0] sm:$0xff]  ;;  %v195_v19 = vld [vmem:[%s1132_s1 + $0x98] sm:$0xff]  ;;  %p787_p13 = pneg %p786_p12 }
  0x19   : > { %v956_v3 = vld [vmem:[%s179_s28 + $0x8] sm:$0xff]  ;;  %v958_v4 = vld [vmem:[%s179_s28] sm:$0xff]  ;;  %388 = vmatprep.subr.mxu1 %v201_v13  ;;  %v194_v20 = vld [vmem:[%s1132_s1 + $0x90] sm:$0xff]  ;;  %s790_s8 = scalar_lea.vmem %s789_s7, 512  ;;  %p791_p0 = scmp.lt.s32.totalorder %s1064_s26, %s789_s7 }
  0x1a   : > { %v207_v5 = vmul.f32 %v956_v3, %v956_v3  ;;  %v964_v6 = vmul.f32 %v958_v4, %v958_v4  ;;  %v193_v21 = vld [vmem:[%s1132_s1 + $0x88] sm:$0xff]  ;;  %v192_v22 = vld [vmem:[%s1132_s1 + $0x80] sm:$0xff]  ;;  %v191_v23 = vld [vmem:[%s1132_s1 + $0x78] sm:$0xff]  ;;  %p792_p1 = scmp.lt.s32.totalorder %s790_s8, %s784_s5 }
  0x1b   : > { %v190_v24 = vld [vmem:[%s1132_s1 + $0x70] sm:$0xff]  ;;  %v189_v25 = vld [vmem:[%s1132_s1 + $0x68] sm:$0xff]  ;;  %v188_v26 = vld [vmem:[%s1132_s1 + $0x60] sm:$0xff] }
  0x1c   : > { %389 = vmatpush1.xpose.msra.mxu1 %v200_v14  ;;  %v184_v30 = vld [vmem:[%s1132_s1 + $0x40] sm:$0xff]  ;;  %v186_v31 = vld [vmem:[%s1132_s1 + $0x50] sm:$0xff]  ;;  %v185_v35 = vld [vmem:[%s1132_s1 + $0x48] sm:$0xff]  ;;  %p793_p2 = por %p792_p1, %p791_p0 }
  0x1d   : > { %390 = vmatprep.subr.mxu1 %v199_v15  ;;  %v187_v36 = vld [vmem:[%s1132_s1 + $0x58] sm:$0xff] }
  0x1e   : > { %p794_p3 = pnand %p793_p2, %p787_p13 }
  0x1f   : > { %v966_v7 = vld [vmem:[#allocation2 + $0x28] sm:$0x1]  ;;  %v968_v8 = vld [vmem:[#allocation2 + $0x20] sm:$0x1] }
  0x20   : > { %703 = vmatprep.subr.msk.mxu0 %vm232_vm1, %v966_v7  ;;  %391 = vmatpush1.xpose.msra.mxu1 %v198_v16 }
  0x21   : > { %704 = vmatpush1.msk.msra.mxu0 %vm232_vm1, %v968_v8  ;;  %392 = vmatprep.subr.mxu1 %v197_v17 }
  0x22   : > { %267 = vmatprep.subr.mxu0 %v956_v3 }
  0x23   : > { %268 = vmatpush1.msra.mxu0 %v958_v4 }
  0x24   : > { %269 = vmatprep.subr.mxu0 %v207_v5  ;;  %393 = vmatpush1.xpose.msra.mxu1 %v196_v18 }
  0x25   : > { %270 = vmatpush1.msra.mxu0 %v964_v6  ;;  %394 = vmatprep.subr.mxu1 %v195_v19 }
  0x26   : > { %705 = vmatmul.mubr.msk.f32.vlgmr.msra.gmra.mxu0 %vm225_vm2, %v180_v9 }
  0x27   : > { %309 = vmatprep.mubr.f32.mxu0 %v876_v1 }
  0x28   : > { %395 = vmatpush1.xpose.msra.mxu1 %v194_v20 }
  0x29   : > { %396 = vmatprep.subr.mxu1 %v193_v21 }
  0x2a   : > { %706 = vmatmul.mubr.msk.f32.gmra.mxu0 %vm225_vm2, %v181_v10 }
  0x2b   : > { %512 = vmatprep.mubr.f32.mxu0 %v207_v5 }
  0x2c   : > { %397 = vmatpush1.xpose.msra.mxu1 %v192_v22 }
  0x2d   : > { %398 = vmatprep.subr.mxu1 %v191_v23 }
  0x30   : > { %399 = vmatpush1.xpose.msra.mxu1 %v190_v24 }
  0x31   : > { %400 = vmatprep.subr.mxu1 %v189_v25 }
  0x34   : > { %401 = vmatpush1.xpose.msra.mxu1 %v188_v26 }
  0xe6   : > { %v305_v27 = vpop.f32.mrf.mxu0 }
  0xe7   : > { %v316_v29 = vmul.f32 -0.5, %v305_v27 }
  0xe8   : > { %v307_v28 = vpop.f32.mrf.mxu0 }
  0xe9   : > { %v317_v33 = vmul.f32 -0.5, %v307_v28  ;;  %v320_v38 = vadd.f32 %v316_v29, %v184_v30 }
  0xea   : > { %v311_v32 = vpop.f32.mrf.mxu0 }
  0xeb   : > { %v318_v34 = vmul.f32 -0.5, %v311_v32  ;;  %v321_v41 = vadd.f32 %v317_v33, %v185_v35 }
  0xec   : > { %v313_v37 = vpop.f32.mrf.mxu0 }
  0xed   : > { %v322_v39 = vadd.f32 %v318_v34, %v186_v31  ;;  %v319_v40 = vmul.f32 -0.5, %v313_v37 }
  0xef   : > { %v324_v42 = vmax.f32 %v320_v38, %v322_v39  ;;  %v323_v43 = vadd.f32 %v319_v40, %v187_v36  ;;  %v182_v40 = vld [vmem:[%s1132_s1 + $0x20] sm:$0xff] }
  0xf1   : > { %v325_v44 = vrot.slane %v324_v42, 4  ;;  %v331_v45 = vmax.f32 %v321_v41, %v323_v43 }
  0xf3   : > { %v326_v46 = vmax.f32 %v324_v42, %v325_v44  ;;  %v332_v47 = vrot.slane %v331_v45, 4 }
  0xf5   : > { %v327_v48 = vrot.slane %v326_v46, 2  ;;  %v333_v49 = vmax.f32 %v331_v45, %v332_v47 }
  0xf7   : > { %v328_v50 = vmax.f32 %v326_v46, %v327_v48  ;;  %v334_v51 = vrot.slane %v333_v49, 2 }
  0xf9   : > { %v329_v52 = vrot.slane %v328_v50, 1  ;;  %v335_v53 = vmax.f32 %v333_v49, %v334_v51 }
  0xfb   : > { %v330_v54 = vmax.f32 %v328_v50, %v329_v52  ;;  %v336_v55 = vrot.slane %v335_v53, 1 }
  0xfd   : > { %v338_v56 = vsub.f32 %v320_v38, %v330_v54  ;;  %v340_v57 = vsub.f32 %v322_v39, %v330_v54  ;;  %v337_v58 = vmax.f32 %v335_v53, %v336_v55 }
  0xff   : > { %v342_v59 = vmul.f32 1.442695, %v338_v56  ;;  %v346_v60 = vmul.f32 1.442695, %v340_v57  ;;  %v339_v61 = vsub.f32 %v321_v41, %v337_v58  ;;  %v341_v62 = vsub.f32 %v323_v43, %v337_v58  ;;  %v183_v43 = vld [vmem:[%s1132_s1 + $0x30] sm:$0xff] }
 0x101   : > { %766 = vpow2.f32 %v342_v59  ;;  %v344_v63 = vmul.f32 1.442695, %v339_v61  ;;  %v348_v1 = vmul.f32 1.442695, %v341_v62 }
 0x102   : > { %768 = vpow2.f32 %v346_v60 }
 0x103   : > { %770 = vpow2.f32 %v344_v63 }
 0x104   : > { %772 = vpow2.f32 %v348_v1 }
 0x10e   : > { %v767_v2 = vpop.eup %766 }
 0x10f   : > { %v769_v5 = vpop.eup %768 }
 0x110   : > { %v771_v9 = vpop.eup %770  ;;  %v350_v10 = vadd.f32 %v769_v5, %v767_v2 }
 0x111   : > { %v773_v11 = vpop.eup %772 }
 0x112   : > { %v351_v12 = vrot.slane %v350_v10, 4  ;;  %v357_v13 = vadd.f32 %v773_v11, %v771_v9 }
 0x114   : > { %v352_v14 = vadd.f32 %v351_v12, %v350_v10  ;;  %v358_v15 = vrot.slane %v357_v13, 4 }
 0x116   : > { %v359_v16 = vadd.f32 %v358_v15, %v357_v13  ;;  %v353_v17 = vrot.slane %v352_v14, 2 }
 0x118   : > { %v360_v18 = vrot.slane %v359_v16, 2  ;;  %v354_v19 = vadd.f32 %v353_v17, %v352_v14 }
 0x11a   : > { %v361_v20 = vadd.f32 %v360_v18, %v359_v16  ;;  %v355_v21 = vrot.slane %v354_v19, 1 }
 0x11c   : > { %v362_v22 = vrot.slane %v361_v20, 1  ;;  %v356_v23 = vadd.f32 %v355_v21, %v354_v19 }
 0x11e   : > { %v363_v24 = vadd.f32 %v362_v22, %v361_v20  ;;  %774 = vrcp.f32 %v356_v23 }
 0x120   : > { %776 = vrcp.f32 %v363_v24 }
 0x12b   : > { %v775_v25 = vpop.eup %774 }
 0x12c   : > { %v365_v29 = vmul.f32 %v775_v25, %v767_v2  ;;  %v368_v30 = vmul.f32 %v775_v25, %v769_v5 }
 0x12d   : > { %v777_v26 = vpop.eup %776 }
 0x12e   : > { %v367_v27 = vmul.f32 %v777_v26, %v771_v9  ;;  %v369_v28 = vmul.f32 %v777_v26, %v773_v11 }
 0x130   : > { %434 = vmatprep.mubr.f32.mxu1 %v367_v27  ;;  %476 = vmatprep.subr.mxu0 %v369_v28 }
 0x131   : > { %435 = vmatmul.mubr.f32.vlgmr.msra.gmra.mxu1 %v365_v29  ;;  %477 = vmatpush1.xpose.msra.mxu0 %v368_v30 }
 0x132   : > { %439 = vmatprep.mubr.f32.mxu1 %v369_v28  ;;  %478 = vmatprep.subr.mxu0 %v367_v27 }
 0x135   : > { %440 = vmatmul.mubr.f32.gmra.mxu1 %v368_v30  ;;  %479 = vmatpush1.xpose.msra.mxu0 %v365_v29 }
 0x138   : > { %513 = vmatmul.mubr.f32.vlgmr.msra.gmra.mxu0 %v964_v6 }
 0x139   : > { %516 = vmatprep.mubr.f32.mxu0 %v956_v3 }
 0x13c   : > { %517 = vmatmul.mubr.f32.gmra.mxu0 %v958_v4 }
 0x13d   : > { %521 = vmatprep.mubr.f32.mxu0 %v966_v7 }
 0x140   : > { %522 = vmatmul.mubr.f32.gmra.mxu0 %v968_v8  ;;  %v528_v8 = vshrl.u32 %v212_v0, 7 }
 0x142   : > { %v529_v36 = vsub.s32 0, %v528_v8 }
 0x1f1   : > { %v436_v31 = vpop.f32.mrf.mxu1 }
 0x1f2   : > { %446 = vst.msk [vmem:[%s1050_s17] sm:$0xff] %vm445_vm3, %v436_v31 }
 0x1f3   : > { %v438_v6 = vpop.f32.mrf.mxu1 }
 0x1f5   : > { %v441_v32 = vpop.f32.mrf.mxu1 }
 0x1f6   : > { %447 = vst.msk [vmem:[%s1050_s17 + $0x8] sm:$0xff] %vm445_vm3, %v441_v32 }
 0x1f7   : > { %v443_v3 = vpop.f32.mrf.mxu1 }
 0x1f8   : > { %v514_v4 = vpop.f32.mrf.mxu0 }
 0x1fa   : > { %v515_v33 = vpop.f32.mrf.mxu0 }
 0x1fc   : > { %v518_v7 = vpop.f32.mrf.mxu0 }
 0x1fe   : > { %v520_v34 = vpop.f32.mrf.mxu0 }
 0x200   : > { %v523_v35 = vpop.f32.mrf.mxu0 }
 0x201   : > { %v534_v37 = vadd.f32 1e-09, %v523_v35  ;;  %v530_v39 = vrot.slane %v523_v35, %v529_v36 }
 0x202   : > { %v525_v38 = vpop.f32.mrf.mxu0 }
 0x203   : > { %778 = vrcp.f32 %v534_v37  ;;  %v531_v41 = vmul.f32 %v530_v39, %v182_v40 }
 0x205   : > { %v532_v42 = vsub.f32 %v518_v7, %v531_v41 }
 0x207   : > { %v533_v0 = vmul.f32 %v532_v42, %v183_v43 }
 0x210   : > { %v779_v44 = vpop.eup %778 }
 0x211   : > { %v539_v45 = vrot.slane %v779_v44, %v529_v36 }
 0x213   : > { %v540_v46 = vmul.f32 %v539_v45, %v533_v0 }
 0x215   : > { %v541_v47 = vmul.f32 %v540_v46, %v540_v46 }
 0x217   : > { %v543_v48 = vsel %vm542_vm4, %v541_v47, 0.0 }
 0x218   : > { %v544_v49 = vrot.slane %v543_v48, 4 }
 0x21a   : > { %v545_v50 = vadd.f32 %v544_v49, %v543_v48 }
 0x21c   : > { %v546_v51 = vrot.slane %v545_v50, 2 }
 0x21e   : > { %v547_v52 = vadd.f32 %v546_v51, %v545_v50 }
 0x220   : > { %v548_v53 = vrot.slane %v547_v52, 1 }
 0x222   : > { %v549_v54 = vadd.f32 %v548_v53, %v547_v52 }
 0x224   : > { %v550_v55 = vmax.f32 %v549_v54, 1e-24 }
 0x226   : > { %780 = vrsqrt.f32 %v550_v55 }
 0x233   : > { %v781_v56 = vpop.eup %780 }
 0x234   : > { %v552_v57 = vmul.f32 %v781_v56, %v540_v46 }
 0x236   : > { %v553_v58 = vmul.f32 %v552_v57, %v552_v57 }
 0x238   : > { %v554_v59 = vsel %vm542_vm4, %v553_v58, 0.0 }
 0x239   : > { %555 = vadd.xlane.f32.xlu0 %v554_v59 }
 0x23a   : > { %797 = shalt.err (!%p794_p3)
}
 0x23b   : > { %s798_s9 = scalar_lea.hbm %s1070_s30, 256  ;;  %s802_s19 = scalar_lea.hbm %s1133_s2, 512 }
 0x23c   : > { %p799_p4 = scmp.ne.s32.totalorder %s1070_s30, %s798_s9  ;;  %p803_p9 = scmp.lt.s32.totalorder %s1070_s30, %s1133_s2 }
 0x23d   : > { %p804_p10 = scmp.lt.s32.totalorder %s802_s19, %s798_s9 }
 0x23e   : > { %p800_p7 = pnand %p799_p4, %p940_p5 }
 0x23f   : > { %p805_p11 = por %p804_p10, %p803_p9 }
 0x240   : > { %p801_p8 = pneg %p800_p7 }
 0x242   : > { %p806_p12 = pnand %p805_p11, %p801_p8 }
 0x244   : > { %809 = shalt.err (!%p806_p12)
}
 0x245   : > { %s879_s25 = smov 128   ;;  %s880_s27 = smov 8  }
 0x246   : > { %718 = dma.vmem_to_hbm [thread:$0]  (%p940_p5), %s1064_s26, 256, %s1070_s30, %s570_s4, %s879_s25, %s879_s25, %s880_s27  }
 0x247   : > { %s700_s29 = sshll.u32 %s1047_s10, 3  ;;  %s711_s5 = sshll.u32 %s923_s16, 7 }
 0x248   : > { %s174_s6 = scalar_lea.vmem [#allocation5], %s700_s29  ;;  %s602_s4 = scalar_lea.hbm %s1134_s3, %s711_s5 }
 0x249   : > { %s604_s7 = sshll.u32 %s174_s6, 4  ;;  %s575_s8 = scalar_lea.sflag [#allocation6], %s1047_s10  ;;  %s605_s7 = int_to_ptr.vmem [resolvable:$true] %s604_s7 }
 0x24a   : > { %s810_s9 = scalar_lea.vmem %s605_s7, 128  ;;  %s881_s11 = smov [#allocation5]  }
 0x24b   : > { %p811_p13 = scmp.ne.s32.totalorder %s605_s7, %s810_s9  ;;  %s814_s17 = sshll.u32 %s881_s11, 4  ;;  %s815_s17 = int_to_ptr.vmem [resolvable:$false] %s814_s17 }
 0x24c   : > { %s816_s16 = scalar_lea.vmem %s815_s17, 256  ;;  %p817_p2 = scmp.lt.s32.totalorder %s605_s7, %s815_s17 }
 0x24d   : > { %p812_p0 = pnand %p811_p13, %p940_p5  ;;  %p818_p3 = scmp.lt.s32.totalorder %s816_s16, %s810_s9 }
 0x24f   : > { %p813_p1 = pneg %p812_p0  ;;  %p819_p4 = por %p818_p3, %p817_p2 }
 0x251   : > { %p820_p7 = pnand %p819_p4, %p813_p1 }
 0x2c2   : > { %v556_v60 = vpop.xlane.xlu0 %555 }
 0x2c3   : > { %v557_v61 = vrot.slane %v556_v60, 4 }
 0x2c5   : > { %v558_v62 = vadd.f32 %v557_v61, %v556_v60 }
 0x2c7   : > { %v559_v63 = vrot.slane %v558_v62, 2 }
 0x2c9   : > { %v560_v1 = vadd.f32 %v559_v63, %v558_v62 }
 0x2cb   : > { %v561_v2 = vrot.slane %v560_v1, 1 }
 0x2cd   : > { %v562_v5 = vadd.f32 %v561_v2, %v560_v1 }
 0x2cf   : > { %716 = vpush %v562_v5 }
 0x300   : > { %s717_s28 = spop %716 }
 0x301   : > { %v564_v9 = vstv %s717_s28 }
 0x302   : > { %v565_v10 = vmax.f32 %v564_v9, 1e-24 }
 0x304   : > { %782 = vrsqrt.f32 %v565_v10 }
 0x311   : > { %v783_v11 = vpop.eup %782 }
 0x312   : > { %v567_v12 = vmul.f32 %v783_v11, %v552_v57 }
 0x314   : > { %568 = vst.msk [vmem:[%s174_s6] sm:$0xff] %vm542_vm4, %v567_v12 }
 0x315   : > { %823 = shalt.err (!%p820_p7)
}
 0x316   : > { %s824_s19 = scalar_lea.hbm %s602_s4, 128  ;;  %s828_s24 = scalar_lea.hbm %s1134_s3, 256 }
 0x317   : > { %p825_p8 = scmp.ne.s32.totalorder %s602_s4, %s824_s19  ;;  %p829_p11 = scmp.lt.s32.totalorder %s602_s4, %s1134_s3 }
 0x318   : > { %p830_p12 = scmp.lt.s32.totalorder %s828_s24, %s824_s19 }
 0x319   : > { %p826_p9 = pnand %p825_p8, %p940_p5 }
 0x31a   : > { %p831_p13 = por %p830_p12, %p829_p11 }
 0x31b   : > { %p827_p10 = pneg %p826_p9 }
 0x31d   : > { %p832_p0 = pnand %p831_p13, %p827_p10 }
 0x31f   : > { %835 = shalt.err (!%p832_p0)
}
 0x320   : > { %719 = dma.vmem_to_hbm [thread:$0]  (%p940_p5), %s605_s7, 128, %s602_s4, %s575_s8  }
 0x321 PF: > { %p729_p1 = scmp.ge.s32.totalorder %s874_s15, 2  ;;  %s616_s28 = sand.u32 1, %s862_s12  }
 0x322   : > { %s617_s29 = scalar_lea.sflag [#allocation4], %s616_s28 }
 0x323   : > { %p723_p2 = pnand %p729_p1, %p944_p6 }
 0x325   : > { %p724_p3 = pneg %p723_p2 }
 0x327   : > { %853 = dma.done.wait (%p724_p3), %s617_s29, 256  }
 0x328   : > { %855 = vsyncadd (%p724_p3), %s617_s29, 4294967040  ;;  %s626_s5 = scalar_lea.sflag [#allocation6], %s616_s28 }
 0x329   : > { %857 = dma.done.wait (%p724_p3), %s626_s5, 128  }
 0x32a   : > { %859 = vsyncadd (%p724_p3), %s626_s5, 4294967168  ;;  %p17_p5 = scmp.ge.s32.totalorder %s927_s18, 4   ;;  %s1137_s12 = smov %s866_s13 }
 0x32b   : > { %s1138_s13 = smov %s870_s14  ;;  %s1139_s14 = smov %s938_s21 }
 0x32c   : > { %s1140_s15 = smov %s927_s18  ;;  %19 = sbr.rel (!%p17_p5) target bundleno = 5 (0x5), region = 81 }
 0x331   :  { %631 = vsyncpa [#allocation4], 1 }
 0x332   :  { %633 = vsyncpa [#allocation4 + $0x1], 1 }
 0x333   :  { %634 = vsyncpa [#allocation6], 1 }
 0x334   :  { %636 = vsyncpa [#allocation6 + $0x1], 1 }

</bundles_post_ra>
